<compile_context>
chip_gen: v6e
topology: v6e:2x2x1
jax: 0.10.0
libtpu: 0.0.40
codegen_flags: <defaults>
</compile_context>

<pallas_src>
import jax
import jax.numpy as jnp
from jax.experimental import pallas as pl
from jax.experimental.pallas import tpu as pltpu


def _feature_att_kernel(feat_ref, w1_ref, s1_ref, b1_ref, w2_ref, b2_ref,
                        cv_ref, out_ref, att_ref):
    """Grid = (B, HW//TN, D//TD).  D-tile axis is innermost & 'arbitrary' so the
    attention scratch computed at d == 0 stays valid across the whole D sweep."""
    d = pl.program_id(2)

    @pl.when(d == 0)
    def _():
        x = feat_ref[0].astype(jnp.float32)                                    # [Cf, TN]
        h = jnp.dot(w1_ref[...], x, preferred_element_type=jnp.float32)        # [Ch, TN]
        h = h * s1_ref[...] + b1_ref[...]                                      # folded eval BatchNorm2d
        h = jnp.where(h > 0, h, 0.01 * h)                                      # LeakyReLU(0.01)
        a = jnp.dot(w2_ref[...], h, preferred_element_type=jnp.float32) + b2_ref[...]  # [Ccv, TN]
        att_ref[...] = jax.nn.sigmoid(a)[:, None, :]                           # [Ccv, 1, TN]

    # Broadcast attention over the disparity (sublane) axis of the cv block.
    out_ref[0] = (att_ref[...] * cv_ref[0]).astype(out_ref.dtype)


def _choose_tiles(D, HW, Ccv, itemsize, block_budget_bytes=4 << 20):
    """Pick (TD, TN): last-two block dims must be multiples of (8, 128) or span the
    full dim; keep a single cv block within ~4 MiB so in+out double-buffering stays
    well under the v7x (64 MiB physical / 32 MiB scoped) VMEM budget."""
    tn = HW                                      # full-dim fallback is always legal
    for c in (2048, 1024, 512, 256, 128):
        if c <= HW and HW % c == 0:
            tn = c
            break
    td = D                                       # full-dim fallback is always legal
    if D % 8 == 0:
        divisors = [c for c in range(D, 7, -8) if D % c == 0]
        td = divisors[-1]
        for c in divisors:                       # largest D-tile that fits the budget
            if Ccv * c * tn * itemsize <= block_budget_bytes:
                td = c
                break
    return td, tn


def feature_att_pallas(cv, feat, w1, bn_scale, bn_bias, w2, b2):
    """cv: [B, Ccv, D, H, W] (NCDHW), feat: [B, Cf, H, W] (NCHW).
    w1: [Ch, Cf], w2: [Ccv, Ch]  (PyTorch conv-weight layout, 1x1 squeezed)."""
    B, Ccv, D, H, W = cv.shape
    _, Cf, _, _ = feat.shape
    Ch = w1.shape[0]
    HW = H * W

    # ---- free reshapes only (no HBM transposes of the cost volume) ----
    feat_flat = feat.reshape(B, Cf, HW)                    # [B, Cf, HW]
    cv_flat = cv.reshape(B, Ccv, D, HW)                    # [B, Ccv, D, HW]
    s1 = bn_scale.reshape(Ch, 1).astype(jnp.float32)
    b1 = bn_bias.reshape(Ch, 1).astype(jnp.float32)
    b2_2d = b2.reshape(Ccv, 1).astype(jnp.float32)

    td, tn = _choose_tiles(D, HW, Ccv, cv.dtype.itemsize)

    # VMEM footprint: cv in/out double-buffered + feat double-buffered + scratch + params.
    cv_block_bytes = Ccv * td * tn * cv.dtype.itemsize
    feat_block_bytes = Cf * tn * feat.dtype.itemsize
    needed = 4 * cv_block_bytes + 2 * feat_block_bytes + Ccv * tn * 4 + (1 << 20)
    vmem_limit = int(min(max(2 * needed, 32 << 20), 48 << 20))   # safe on v5e/v6e/v7x

    # Advisory cost estimate for XLA scheduling (mem-bound op: cv read + write dominate).
    cost = pl.CostEstimate(
        flops=int(2 * B * HW * (Cf * Ch + Ch * Ccv) + B * Ccv * D * HW),
        transcendentals=int(B * HW * Ccv),
        bytes_accessed=int(2 * B * Ccv * D * HW * cv.dtype.itemsize
                           + B * Cf * HW * feat.dtype.itemsize),
    )

    fixed = lambda b, n, d: (0, 0)

    out_flat = pl.pallas_call(
        _feature_att_kernel,
        out_shape=jax.ShapeDtypeStruct((B, Ccv, D, HW), cv.dtype),
        grid_spec=pltpu.PrefetchScalarGridSpec(
            num_scalar_prefetch=0,
            grid=(B, HW // tn, D // td),
            in_specs=[
                pl.BlockSpec((1, Cf, tn), lambda b, n, d: (b, 0, n)),        # feat tile
                pl.BlockSpec((Ch, Cf), fixed),                               # w1
                pl.BlockSpec((Ch, 1), fixed),                                # bn scale
                pl.BlockSpec((Ch, 1), fixed),                                # bn bias
                pl.BlockSpec((Ccv, Ch), fixed),                              # w2
                pl.BlockSpec((Ccv, 1), fixed),                               # b2
                pl.BlockSpec((1, Ccv, td, tn), lambda b, n, d: (b, 0, d, n)),  # cv tile
            ],
            out_specs=pl.BlockSpec((1, Ccv, td, tn), lambda b, n, d: (b, 0, d, n)),
            scratch_shapes=[pltpu.VMEM((Ccv, 1, tn), jnp.float32)],
        ),
        compiler_params=pltpu.CompilerParams(
            dimension_semantics=("parallel", "parallel", "arbitrary"),
            vmem_limit_bytes=vmem_limit),
        cost_estimate=cost,
        # TODO(synk): input_output_aliases={6: 0} would avoid a second cv-sized HBM
        # buffer, but requires the caller to donate cv; left off for safety here.
    )(feat_flat, w1, s1, b1, w2, b2_2d, cv_flat)

    return out_flat.reshape(B, Ccv, D, H, W)   # free reshape back to NCDHW


def feature_att_ref(cv, feat, w1, bn_scale, bn_bias, w2, b2):
    """Pure-JAX reference (same math, no Pallas)."""
    x = jnp.einsum('oc,bchw->bohw', w1, feat)
    x = x * bn_scale[None, :, None, None] + bn_bias[None, :, None, None]
    x = jnp.where(x > 0, x, 0.01 * x)
    a = jnp.einsum('oc,bchw->bohw', w2, x) + b2[None, :, None, None]
    att = jax.nn.sigmoid(a)[:, :, None, :, :]
    return att * cv


if __name__ == "__main__":
    # Small shapes consistent with the module:
    B, Ccv, D, H, W = 2, 4, 8, 16, 16   # cost volume [B, cv_chan, D, H, W]
    Cf = 8                              # feat_chan
    Ch = Cf // 2

    key = jax.random.PRNGKey(0)
    k_cv, k_feat, k_w1, k_w2, k_b2 = jax.random.split(key, 5)

    cv = jax.random.normal(k_cv, (B, Ccv, D, H, W), dtype=jnp.float32)
    feat = jax.random.normal(k_feat, (B, Cf, H, W), dtype=jnp.float32)

    # Deterministic parameter init following SubModule.weight_init:
    #   Conv2d: normal(0, sqrt(2 / (kh*kw*out_ch))), 1x1 => sqrt(2/out_ch)
    # Weights kept in PyTorch [out, in] layout (1x1 kernel squeezed).
    w1 = jax.random.normal(k_w1, (Ch, Cf), dtype=jnp.float32) * jnp.sqrt(2.0 / Ch)
    w2 = jax.random.normal(k_w2, (Ccv, Ch), dtype=jnp.float32) * jnp.sqrt(2.0 / Ccv)
    b2 = jax.random.normal(k_b2, (Ccv,), dtype=jnp.float32) * 0.1
    # BatchNorm2d freshly initialized, eval mode: gamma=1, beta=0, mean=0, var=1
    eps = 1e-5
    gamma, beta = jnp.ones((Ch,), jnp.float32), jnp.zeros((Ch,), jnp.float32)
    run_mean, run_var = jnp.zeros((Ch,), jnp.float32), jnp.ones((Ch,), jnp.float32)
    bn_scale = gamma / jnp.sqrt(run_var + eps)
    bn_bias = beta - run_mean * bn_scale
    # TODO(synk): train-mode BatchNorm (batch statistics) is not implemented; eval-mode BN only.

    out = feature_att_pallas(cv, feat, w1, bn_scale, bn_bias, w2, b2)
    out = jax.block_until_ready(out)

    ref = feature_att_ref(cv, feat, w1, bn_scale, bn_bias, w2, b2)
    assert out.shape == (B, Ccv, D, H, W)
    assert jnp.allclose(out, ref, atol=1e-5, rtol=1e-5), float(jnp.max(jnp.abs(out - ref)))

    print("KERNEL_OK")
</pallas_src>

<mosaic_0001>
module attributes {stable_mosaic.version = 11 : i64} {
  func.func @_feature_att_kernel(%arg0: i32, %arg1: i32, %arg2: i32, %arg3: memref<1x8x256xf32, #tpu.memory_space<vmem>>, %arg4: memref<4x8xf32, #tpu.memory_space<vmem>>, %arg5: memref<4x1xf32, #tpu.memory_space<vmem>>, %arg6: memref<4x1xf32, #tpu.memory_space<vmem>>, %arg7: memref<4x4xf32, #tpu.memory_space<vmem>>, %arg8: memref<4x1xf32, #tpu.memory_space<vmem>>, %arg9: memref<1x4x8x256xf32, #tpu.memory_space<vmem>>, %arg10: memref<1x4x8x256xf32, #tpu.memory_space<vmem>>, %arg11: memref<4x1x256xf32, #tpu.memory_space<vmem>>) attributes {dimension_semantics = [#tpu.dimension_semantics<parallel>, #tpu.dimension_semantics<parallel>, #tpu.dimension_semantics<arbitrary>], iteration_bounds = array<i64: 2, 1, 1>, scalar_prefetch = 0 : i64, scratch_operands = 1 : i64, tpu.core_type = #tpu.core_type<tc>, window_params = [{transform_indices = @transform_0, window_bounds = array<i64: 1, 8, 256>}, {pipeline_mode = #tpu.pipeline_mode<synchronous>, transform_indices = @transform_1, window_bounds = array<i64: 4, 8>}, {pipeline_mode = #tpu.pipeline_mode<synchronous>, transform_indices = @transform_2, window_bounds = array<i64: 4, 1>}, {pipeline_mode = #tpu.pipeline_mode<synchronous>, transform_indices = @transform_3, window_bounds = array<i64: 4, 1>}, {pipeline_mode = #tpu.pipeline_mode<synchronous>, transform_indices = @transform_4, window_bounds = array<i64: 4, 4>}, {pipeline_mode = #tpu.pipeline_mode<synchronous>, transform_indices = @transform_5, window_bounds = array<i64: 4, 1>}, {transform_indices = @transform_6, window_bounds = array<i64: 1, 4, 8, 256>}, {transform_indices = @transform_7, window_bounds = array<i64: 1, 4, 8, 256>}]} {
    %c0_i32 = arith.constant 0 : i32
    %0 = arith.cmpi eq, %arg2, %c0_i32 : i32
    %1 = arith.extui %0 : i1 to i32
    %c0_i32_0 = arith.constant 0 : i32
    %2 = arith.cmpi ne, %1, %c0_i32_0 : i32
    scf.if %2 {
      %c0_11 = arith.constant 0 : index
      %c0_12 = arith.constant 0 : index
      %c0_13 = arith.constant 0 : index
      %11 = vector.load %arg3[%c0_11, %c0_12, %c0_13] : memref<1x8x256xf32, #tpu.memory_space<vmem>>, vector<1x8x256xf32>
      %12 = vector.shape_cast %11 : vector<1x8x256xf32> to vector<8x256xf32>
      %c0_14 = arith.constant 0 : index
      %c0_15 = arith.constant 0 : index
      %13 = vector.load %arg4[%c0_14, %c0_15] : memref<4x8xf32, #tpu.memory_space<vmem>>, vector<4x8xf32>
      %cst = arith.constant dense<0.000000e+00> : vector<4x256xf32>
      %14 = tpu.matmul %13, %12, %cst {dimension_numbers = #tpu.dot_dimension_numbers<[1], [0], [0], [1], [0, 0, 1, 1], [], []>} : vector<4x8xf32>, vector<8x256xf32>, vector<4x256xf32> -> vector<4x256xf32>
      %c0_16 = arith.constant 0 : index
      %c0_17 = arith.constant 0 : index
      %15 = vector.load %arg5[%c0_16, %c0_17] : memref<4x1xf32, #tpu.memory_space<vmem>>, vector<4x1xf32>
      %16 = vector.broadcast %15 : vector<4x1xf32> to vector<4x256xf32>
      %17 = arith.mulf %14, %16 : vector<4x256xf32>
      %c0_18 = arith.constant 0 : index
      %c0_19 = arith.constant 0 : index
      %18 = vector.load %arg6[%c0_18, %c0_19] : memref<4x1xf32, #tpu.memory_space<vmem>>, vector<4x1xf32>
      %19 = vector.broadcast %18 : vector<4x1xf32> to vector<4x256xf32>
      %20 = arith.addf %17, %19 : vector<4x256xf32>
      %cst_20 = arith.constant 0.000000e+00 : f32
      %21 = vector.broadcast %cst_20 : f32 to vector<4x256xf32>
      %22 = arith.cmpf ogt, %20, %21 : vector<4x256xf32>
      %cst_21 = arith.constant 0.00999999977 : f32
      %23 = vector.broadcast %cst_21 : f32 to vector<4x256xf32>
      %24 = arith.mulf %23, %20 : vector<4x256xf32>
      %25 = arith.select %22, %20, %24 : vector<4x256xi1>, vector<4x256xf32>
      %c0_22 = arith.constant 0 : index
      %c0_23 = arith.constant 0 : index
      %26 = vector.load %arg7[%c0_22, %c0_23] : memref<4x4xf32, #tpu.memory_space<vmem>>, vector<4x4xf32>
      %cst_24 = arith.constant dense<0.000000e+00> : vector<4x256xf32>
      %27 = tpu.matmul %26, %25, %cst_24 {dimension_numbers = #tpu.dot_dimension_numbers<[1], [0], [0], [1], [0, 0, 1, 1], [], []>} : vector<4x4xf32>, vector<4x256xf32>, vector<4x256xf32> -> vector<4x256xf32>
      %c0_25 = arith.constant 0 : index
      %c0_26 = arith.constant 0 : index
      %28 = vector.load %arg8[%c0_25, %c0_26] : memref<4x1xf32, #tpu.memory_space<vmem>>, vector<4x1xf32>
      %29 = vector.broadcast %28 : vector<4x1xf32> to vector<4x256xf32>
      %30 = arith.addf %27, %29 : vector<4x256xf32>
      %31 = arith.negf %30 : vector<4x256xf32>
      %32 = math.exp %31 : vector<4x256xf32>
      %cst_27 = arith.constant 1.000000e+00 : f32
      %33 = vector.broadcast %cst_27 : f32 to vector<4x256xf32>
      %34 = arith.addf %33, %32 : vector<4x256xf32>
      %35 = arith.divf %33, %34 : vector<4x256xf32>
      %36 = vector.shape_cast %35 : vector<4x256xf32> to vector<4x1x256xf32>
      %c0_28 = arith.constant 0 : index
      %c0_29 = arith.constant 0 : index
      %c0_30 = arith.constant 0 : index
      %37 = vector.load %arg11[%c0_28, %c0_29, %c0_30] : memref<4x1x256xf32, #tpu.memory_space<vmem>>, vector<4x1x256xf32>
      tpu.vector_store %arg11[%c0_28, %c0_29, %c0_30], %36 {strides = array<i32>} : memref<4x1x256xf32, #tpu.memory_space<vmem>>, vector<4x1x256xf32>,
    } else {
    }
    %c0 = arith.constant 0 : index
    %c0_1 = arith.constant 0 : index
    %c0_2 = arith.constant 0 : index
    %3 = vector.load %arg11[%c0, %c0_1, %c0_2] : memref<4x1x256xf32, #tpu.memory_space<vmem>>, vector<4x1x256xf32>
    %c0_3 = arith.constant 0 : index
    %c0_4 = arith.constant 0 : index
    %c0_5 = arith.constant 0 : index
    %c0_6 = arith.constant 0 : index
    %4 = vector.load %arg9[%c0_3, %c0_4, %c0_5, %c0_6] : memref<1x4x8x256xf32, #tpu.memory_space<vmem>>, vector<1x4x8x256xf32>
    %5 = vector.shape_cast %4 : vector<1x4x8x256xf32> to vector<4x8x256xf32>
    %6 = vector.broadcast %3 : vector<4x1x256xf32> to vector<4x8x256xf32>
    %7 = arith.mulf %6, %5 : vector<4x8x256xf32>
    %c0_7 = arith.constant 0 : index
    %c0_8 = arith.constant 0 : index
    %c0_9 = arith.constant 0 : index
    %c0_10 = arith.constant 0 : index
    %8 = vector.load %arg10[%c0_7, %c0_8, %c0_9, %c0_10] : memref<1x4x8x256xf32, #tpu.memory_space<vmem>>, vector<1x4x8x256xf32>
    %9 = vector.shape_cast %8 : vector<1x4x8x256xf32> to vector<4x8x256xf32>
    %10 = vector.shape_cast %7 : vector<4x8x256xf32> to vector<1x4x8x256xf32>
    tpu.vector_store %arg10[%c0_7, %c0_8, %c0_9, %c0_10], %10 {strides = array<i32>} : memref<1x4x8x256xf32, #tpu.memory_space<vmem>>, vector<1x4x8x256xf32>,
    return
  }
  func.func @transform_0(%arg0: i32, %arg1: i32, %arg2: i32) -> (i32, i32, i32) {
    %c0_i32 = arith.constant 0 : i32
    %c0_i32_0 = arith.constant 0 : i32
    return %arg0, %c0_i32, %arg1 : i32, i32, i32
  }
  func.func @transform_1(%arg0: i32, %arg1: i32, %arg2: i32) -> (i32, i32) {
    %c0_i32 = arith.constant 0 : i32
    %c0_i32_0 = arith.constant 0 : i32
    %c0_i32_1 = arith.constant 0 : i32
    return %c0_i32, %c0_i32_0 : i32, i32
  }
  func.func @transform_2(%arg0: i32, %arg1: i32, %arg2: i32) -> (i32, i32) {
    %c0_i32 = arith.constant 0 : i32
    %c0_i32_0 = arith.constant 0 : i32
    %c0_i32_1 = arith.constant 0 : i32
    return %c0_i32, %c0_i32_0 : i32, i32
  }
  func.func @transform_3(%arg0: i32, %arg1: i32, %arg2: i32) -> (i32, i32) {
    %c0_i32 = arith.constant 0 : i32
    %c0_i32_0 = arith.constant 0 : i32
    %c0_i32_1 = arith.constant 0 : i32
    return %c0_i32, %c0_i32_0 : i32, i32
  }
  func.func @transform_4(%arg0: i32, %arg1: i32, %arg2: i32) -> (i32, i32) {
    %c0_i32 = arith.constant 0 : i32
    %c0_i32_0 = arith.constant 0 : i32
    %c0_i32_1 = arith.constant 0 : i32
    return %c0_i32, %c0_i32_0 : i32, i32
  }
  func.func @transform_5(%arg0: i32, %arg1: i32, %arg2: i32) -> (i32, i32) {
    %c0_i32 = arith.constant 0 : i32
    %c0_i32_0 = arith.constant 0 : i32
    %c0_i32_1 = arith.constant 0 : i32
    return %c0_i32, %c0_i32_0 : i32, i32
  }
  func.func @transform_6(%arg0: i32, %arg1: i32, %arg2: i32) -> (i32, i32, i32, i32) {
    %c0_i32 = arith.constant 0 : i32
    %c0_i32_0 = arith.constant 0 : i32
    return %arg0, %c0_i32, %arg2, %arg1 : i32, i32, i32, i32
  }
  func.func @transform_7(%arg0: i32, %arg1: i32, %arg2: i32) -> (i32, i32, i32, i32) {
    %c0_i32 = arith.constant 0 : i32
    %c0_i32_0 = arith.constant 0 : i32
    return %arg0, %c0_i32, %arg2, %arg1 : i32, i32, i32, i32
  }
}

</mosaic_0001>

<bundles_post_ra>
// kernel: tpu_custom_call.1
= control target key start
LH: loop header
LB: loop body
LE: loop exit
PB: predicated region body
PF: predicated region fallthrough
CT: control target
= control target key end

     0   :  { %s1338_s0 = inlined_call_operand.hbm [shape: f32[2,8,256], index: 0, kind: input, shape index: {}]   ;;  %s1339_s1 = inlined_call_operand.vmem [shape: f32[4,8], index: 1, kind: input, shape index: {}]   ;;  %s1340_s2 = inlined_call_operand.vmem [shape: f32[4,1], index: 2, kind: input, shape index: {}]   ;;  %s1341_s3 = inlined_call_operand.vmem [shape: f32[4,1], index: 3, kind: input, shape index: {}]   ;;  %s1342_s4 = inlined_call_operand.vmem [shape: f32[4,4], index: 4, kind: input, shape index: {}]   ;;  %s1343_s5 = inlined_call_operand.vmem [shape: f32[4,1], index: 5, kind: input, shape index: {}]   ;;  %s1344_s6 = inlined_call_operand.hbm [shape: f32[2,4,8,256], index: 6, kind: input, shape index: {}]   ;;  %s1345_s7 = inlined_call_operand.hbm [shape: f32[2,4,8,256], index: 7, kind: output, shape index: {}]  }
   0x1   :  { %1347 = sst [smem:[#allocation14_spill]] %s1338_s0 }
   0x2   :  { %12 = vsyncpa [#allocation4], 0 }
   0x3   :  { %14 = vsyncpa [#allocation4 + $0x1], 0 }
   0x4   :  { %15 = vsyncpa [#allocation7], 0 }
   0x5   :  { %17 = vsyncpa [#allocation7 + $0x1], 0 }
   0x6   :  { %18 = vsyncpa [#allocation5], 0 }
   0x7   :  { %20 = vsyncpa [#allocation5 + $0x1], 0  ;;  %s1131_s24 = smov 0   ;;  %s1133_s25 = smov 0  }
   0x8   :  { %s1135_s26 = smov 0   ;;  %s1137_s27 = smov 0  }
   0x9   :  { %s1139_s28 = smov 0   ;;  %s1141_s29 = smov 0  }
   0xa LB: > { %s827_s30 = sadd.s32 4294967295, %s1079_s29   ;;  %s828_s8 = sadd.s32 4294967294, %s1079_s29   ;;  %s1079_s29 = sphi %s1141_s29, %s26_s29   ;;  %s1075_s28 = sphi %s1139_s28, %s1364_s28   ;;  %s1071_s27 = sphi %s1137_s27, %s1363_s27   ;;  %s1067_s26 = sphi %s1135_s26, %s1362_s26   ;;  %s1063_s25 = sphi %s1133_s25, %s1361_s25   ;;  %s1059_s24 = sphi %s1131_s24, %s1360_s24  }
   0xb   : > { %s45_s9 = sadd.s32 1, %s1075_s28  ;;  %s54_s10 = sadd.s32 1, %s1067_s26 }
   0xc   : > { %p47_p0 = scmp.ge.s32.totalorder %s45_s9, 2  ;;  %p61_p1 = scmp.ne.s32.totalorder %s1067_s26, %s1063_s25 }
   0xd   : > { %p62_p2 = scmp.eq.s32.totalorder %s1079_s29, 0  ;;  %p67_p3 = scmp.ne.s32.totalorder %s1063_s25, %s1059_s24 }
   0xe   : > { %s1366_s9 = smov (%p47_p0, %s45_s9), 0  ;;  %p68_p5 = scmp.eq.s32.totalorder %s827_s30, 0 }
   0xf   : > { %1348 = sst [smem:[#allocation12_spill]] %s1366_s9  ;;  %p1172_p4 = por %p62_p2, %p61_p1 }
  0x10   : > { %s49_s12 = ssub.s32 %s1075_s28, %s1366_s9  ;;  %p230_p6 = scmp.eq.s32.totalorder %s827_s30, 1 }
  0x11   : > { %p52_p7 = scmp.eq.s32.totalorder %s49_s12, 0  ;;  %p1178_p8 = por %p68_p5, %p67_p3 }
  0x12   : > { %p1182_p9 = por %p230_p6, %p61_p1  ;;  %p236_p10 = scmp.eq.s32.totalorder %s828_s8, 1 }
  0x13   : > { %s1187_s15 = scalar_select %p52_p7, %s1067_s26, %s54_s10  }
  0x14   : > { %p1189_p11 = por %p236_p10, %p67_p3  ;;  %p872_p13 = scmp.lt.s32.totalorder %s1079_s29, 2 }
  0x15   : > { %1352 = sst [smem:[#allocation13_spill]] %s1187_s15  ;;  %s1196_s17 = sand.u32 1, %s1067_s26  }
  0x16   : > { %s831_s18 = sshll.u32 %s1196_s17, 4  ;;  %s852_s19 = sshll.u32 %s1075_s28, 8 }
  0x17   : > { %s1354_s0 = sld [smem:[#allocation14_spill]]  ;;  %s275_s23 = scalar_lea.vmem [#allocation3], %s831_s18 }
  0x18   : > { %s285_s30 = sshll.u32 %s275_s23, 4  ;;  %p1205_p0 = pnand %p872_p13, %p1172_p4  ;;  %s286_s30 = int_to_ptr.vmem [resolvable:$true] %s285_s30 }
  0x19   : > { %p837_p1 = scmp.ge.s32.totalorder %s1079_s29, 1  ;;  %p315_p2 = scmp.lt.s32.totalorder %s1079_s29, 3 }
  0x1a   : > { %s272_s10 = scalar_lea.sflag [#allocation4], %s1196_s17  ;;  %p941_p3 = pneg %p1205_p0 }
  0x1b   : > { %s952_s12 = scalar_lea.vmem %s286_s30, 256  ;;  %s1081_s18 = smov [#allocation3]  }
  0x1c   : > { %p953_p5 = scmp.ne.s32.totalorder %s286_s30, %s952_s12 }
  0x1d   : > { %s283_s22 = scalar_lea.hbm %s1354_s0, %s852_s19  ;;  %s957_s19 = sshll.u32 %s1081_s18, 4  ;;  %s958_s19 = int_to_ptr.vmem [resolvable:$false] %s957_s19 }
  0x1e   : > { %p955_p6 = pnand %p953_p5, %p941_p3  ;;  %s959_s11 = scalar_lea.vmem %s958_s19, 512 }
  0x1f   : > { %p960_p4 = scmp.lt.s32.totalorder %s286_s30, %s958_s19  ;;  %p961_p10 = scmp.lt.s32.totalorder %s959_s11, %s952_s12 }
  0x20   : > { %p956_p7 = pneg %p955_p6 }
  0x21   : > { %p962_p13 = por %p961_p10, %p960_p4 }
  0x23   : > { %p963_p12 = pnand %p962_p13, %p956_p7 }
  0x25   : > { %966 = shalt.err (!%p963_p12)
}
  0x26   : > { %864 = dma.hbm_to_vmem [thread:$0]  (!%p1205_p0), %s283_s22, 256, %s286_s30, %s272_s10  }
  0x27   : > { %p1223_p5 = pnand %p837_p1, %p315_p2  ;;  %s834_s21 = sshll.u32 %s1196_s17, 6 }
  0x28   : > { %s853_s23 = sshll.u32 %s1075_s28, 10  ;;  %s296_s11 = scalar_lea.vmem [#allocation6], %s834_s21 }
  0x29   : > { %s306_s19 = scalar_lea.hbm %s1344_s6, %s853_s23  ;;  %s307_s0 = sshll.u32 %s296_s11, 4  ;;  %s308_s0 = int_to_ptr.vmem [resolvable:$true] %s307_s0 }
  0x2a   : > { %s293_s9 = scalar_lea.sflag [#allocation7], %s1196_s17  ;;  %s980_s15 = scalar_lea.vmem %s308_s0, 1024 }
  0x2b   : > { %p981_p12 = scmp.ne.s32.totalorder %s308_s0, %s980_s15  ;;  %s1082_s22 = smov [#allocation6]  }
  0x2c   : > { %s985_s30 = sshll.u32 %s1082_s22, 4  ;;  %s986_s30 = int_to_ptr.vmem [resolvable:$false] %s985_s30 }
  0x2d   : > { %p983_p6 = pnand %p981_p12, %p941_p3  ;;  %s987_s10 = scalar_lea.vmem %s986_s30, 2048 }
  0x2e   : > { %p988_p1 = scmp.lt.s32.totalorder %s308_s0, %s986_s30  ;;  %p989_p2 = scmp.lt.s32.totalorder %s987_s10, %s980_s15 }
  0x2f   : > { %p984_p7 = pneg %p983_p6 }
  0x30   : > { %p990_p4 = por %p989_p2, %p988_p1 }
  0x32   : > { %p991_p10 = pnand %p990_p4, %p984_p7 }
  0x34   : > { %994 = shalt.err (!%p991_p10)
}
  0x35   : > { %s1083_s23 = smov 256   ;;  %s1084_s21 = smov 16  }
  0x36   : > { %867 = dma.hbm_to_vmem [thread:$0]  (!%p1205_p0), %s306_s19, 1024, %s308_s0, %s293_s9, %s1083_s23, %s1083_s23, %s1084_s21  }
  0x37   : > { %319 = sbr.rel (%p1223_p5) target bundleno = 538 (0x21a), region = 48  ;;  %s1241_s17 = sand.u32 (!%p1223_p5), 1, %s1063_s25  }
  0x38   : > { %s838_s12 = sshll.u32 (!%p1223_p5), %s1241_s17, 4  ;;  %s322_s18 = scalar_lea.sflag (!%p1223_p5), [#allocation4], %s1241_s17 }
  0x39   : > { %s325_s15 = scalar_lea.vmem (!%p1223_p5), [#allocation3], %s838_s12 }
  0x3c   : > { %1046 = dma.done.wait (%p1178_p8), %s322_s18, 256  }
  0x3d   : > { %1048 = vsyncadd (%p1178_p8), %s322_s18, 4294967040  ;;  %s839_s0 = sshll.u32 %s1241_s17, 6  ;;  %s331_s9 = scalar_lea.sflag [#allocation7], %s1241_s17 }
  0x3e   : > { %s1253_s8 = scalar_lea.vmem [#allocation6], %s839_s0 }
  0x3f   : > { %1050 = dma.done.wait (%p1178_p8), %s331_s9, 1024  }
  0x40   : > { %1052 = vsyncadd (%p1178_p8), %s331_s9, 4294966272  ;;  %v1085_v0 = vmov 0.0   ;;  %v1086_v1 = vmov 0   ;;  %v378_v2 = vld [vmem:[%s325_s15 + $0x8] sm:$0xff]  ;;  %v377_v3 = vld [vmem:[%s325_s15] sm:$0xff]  ;;  %vm380_vm0 = vcmask 64512   ;;  %v584_v34 = vlaneseq }
  0x41   : > { %448 = vmatprep.mubr.f32.mxu0 %v1085_v0  ;;  %929 = vset.pattern.permute.xlu0 %v1086_v1  ;;  %v379_v4 = vld [vmem:[%s1339_s1] sm:$0xf]  ;;  %vm488_vm2 = vcmask 1043456   ;;  %vm484_vm4 = vcmask 31744   ;;  %v1087_v32 = vmov 1966171168  }
  0x42   : > { %559 = vmatprep.mubr.f32.mxu1 %v1085_v0  ;;  %930 = vset.pattern.permute.xlu1 %v1086_v1  ;;  %v455_v5 = vld [vmem:[%s1340_s2] sm:$0xf]  ;;  %v582_v33 = vunpack.c.l.s4 %v1087_v32  ;;  %v585_v36 = vshrl.u32 %v584_v34, 7  ;;  %vm611_vm5 = vcmp.lt.s32.totalorder %v584_v34, 256  ;;  %v621_v50 = vld [vmem:[%s1253_s8] sm:$0xff]  ;;  %v622_v51 = vld [vmem:[%s1253_s8 + $0x8] sm:$0xff] }
  0x43   : > { %414 = vmatprep.subr.mxu0 %v378_v2  ;;  %458 = vperm.xlu0 %929, %v455_v5   ;;  %v463_v6 = vld [vmem:[%s1341_s3] sm:$0xf]  ;;  %v623_v52 = vld [vmem:[%s1253_s8 + $0x10] sm:$0xff]  ;;  %v625_v58 = vld [vmem:[%s1253_s8 + $0x20] sm:$0xff]  ;;  %s854_s18 = sshll.u32 %s1071_s27, 10  ;;  %s369_s15 = scalar_lea.vmem [#allocation8], %s839_s0 }
  0x44   : > { %415 = vmatpush1.msra.mxu0 %v377_v3  ;;  %v478_v7 = vld [vmem:[%s1343_s5] sm:$0xf]  ;;  %v583_v35 = vunpack.c.0.s8 %v582_v33  ;;  %v635_v47 = vsub.s32 0, %v585_v36  ;;  %v639_v48 = vsub.s32 1, %v585_v36  ;;  %v626_v59 = vld [vmem:[%s1253_s8 + $0x28] sm:$0xff]  ;;  %s707_s9 = sshll.u32 %s369_s15, 4  ;;  %s1288_s0 = scalar_lea.hbm %s1345_s7, %s854_s18  ;;  %s1290_s9 = int_to_ptr.vmem [resolvable:$true] %s707_s9 }
  0x45   : > { %841 = vmatmul.mubr.msk.f32.vlgmr.msra.gmra.mxu0 %vm380_vm0, %v379_v4  ;;  %481 = vperm.xlu1 %930, %v478_v7   ;;  %v477_v19 = vld [vmem:[%s1342_s4] sm:$0xf]  ;;  %v627_v1 = vld [vmem:[%s1253_s8 + $0x30] sm:$0xff]  ;;  %s995_s19 = scalar_lea.vmem %s1290_s9, 1024  ;;  %s1088_s11 = smov [#allocation8]  }
  0x46   : > { %v586_v38 = vsub.s32 %v583_v35, %v585_v36  ;;  %v624_v57 = vld [vmem:[%s1253_s8 + $0x18] sm:$0xff]  ;;  %p996_p8 = scmp.ne.s32.totalorder %s1290_s9, %s995_s19  ;;  %s999_s22 = sshll.u32 %s1088_s11, 4  ;;  %s1000_s22 = int_to_ptr.vmem [resolvable:$false] %s999_s22 }
  0x47   : > { %466 = vperm.xlu0 %929, %v463_v6   ;;  %v628_v2 = vld [vmem:[%s1253_s8 + $0x38] sm:$0xff]  ;;  %s690_s8 = scalar_lea.sflag [#allocation5], %s1241_s17  ;;  %s1001_s13 = scalar_lea.vmem %s1000_s22, 2048 }
  0x48   : > { %p997_p0 = pnand %p996_p8, %p1182_p9  ;;  %p1002_p13 = scmp.lt.s32.totalorder %s1290_s9, %s1000_s22 }
  0x49   : > { %p1003_p5 = scmp.lt.s32.totalorder %s1001_s13, %s995_s19 }
  0x4a   : > { %p998_p3 = pneg %p997_p0 }
  0x4b   : > { %p1004_p12 = por %p1003_p5, %p1002_p13 }
  0x4d   : > { %p1005_p6 = pnand %p1004_p12, %p998_p3 }
  0xbe   : > { %v459_v8 = vpop.permute.xlu0 %458 }
  0xc0   : > { %v482_v21 = vpop.permute.xlu1 %481 }
  0xc2   : > { %v467_v11 = vpop.permute.xlu0 %466 }
 0x105   : > { %v450_v9 = vpop.f32.mrf.mxu0 }
 0x106   : > { %v461_v10 = vmul.f32 %v459_v8, %v450_v9 }
 0x107   : > { %v452_v12 = vpop.f32.mrf.mxu0 }
 0x108   : > { %v469_v13 = vadd.f32 %v467_v11, %v461_v10  ;;  %v462_v14 = vmul.f32 %v459_v8, %v452_v12 }
 0x10a   : > { %v470_v15 = vadd.f32 %v467_v11, %v462_v14  ;;  %v473_v16 = vmul.f32 0.01, %v469_v13  ;;  %vm471_vm3 = vcmp.gt.f32.partialorder %v469_v13, 0.0 }
 0x10c   : > { %vm472_vm1 = vcmp.gt.f32.partialorder %v470_v15, 0.0  ;;  %v474_v17 = vmul.f32 0.01, %v470_v15  ;;  %v475_v20 = vsel %vm471_vm3, %v469_v13, %v473_v16 }
 0x10e   : > { %v476_v18 = vsel %vm472_vm1, %v470_v15, %v474_v17 }
 0x10f   : > { %842 = vmatprep.subr.msk.mxu1 %vm488_vm2, %v476_v18 }
 0x110   : > { %843 = vmatpush1.msk.msra.mxu1 %vm488_vm2, %v475_v20 }
 0x111   : > { %844 = vmatmul.mubr.msk.f32.vlgmr.msra.gmra.mxu1 %vm484_vm4, %v477_v19 }
 0x1d1   : > { %v561_v22 = vpop.f32.mrf.mxu1 }
 0x1d2   : > { %v562_v23 = vadd.f32 %v561_v22, %v482_v21 }
 0x1d3   : > { %v563_v24 = vpop.f32.mrf.mxu1 }
 0x1d4   : > { %v845_v25 = vmul.f32 -1.442695, %v562_v23  ;;  %v564_v26 = vadd.f32 %v563_v24, %v482_v21 }
 0x1d6   : > { %931 = vpow2.f32 %v845_v25  ;;  %v846_v27 = vmul.f32 -1.442695, %v564_v26 }
 0x1d8   : > { %933 = vpow2.f32 %v846_v27 }
 0x1e3   : > { %v932_v28 = vpop.eup %931 }
 0x1e4   : > { %v572_v29 = vadd.f32 1.0, %v932_v28 }
 0x1e5   : > { %v934_v30 = vpop.eup %933 }
 0x1e6   : > { %v573_v31 = vadd.f32 1.0, %v934_v30  ;;  %935 = vrcp.f32 %v572_v29 }
 0x1e8   : > { %937 = vrcp.f32 %v573_v31 }
 0x1f3   : > { %v936_v37 = vpop.eup %935 }
 0x1f5   : > { %v938_v39 = vpop.eup %937 }
 0x1f6   : > { %v580_v40 = vcombine.low %v936_v37, %v938_v39 }
 0x1f8   : > { %v587_v41 = vrot.slane %v580_v40, %v586_v38 }
 0x1fa   : > { %v588_v42 = vcombine.high %v587_v41, %v587_v41  ;;  %v595_v43 = vrot.slane %v587_v41, %v586_v38 }
 0x1fc   : > { %v602_v44 = vrot.slane %v588_v42, %v586_v38  ;;  %v603_v45 = vcombine.high %v595_v43, %v595_v43  ;;  %613 = vst.msk [vmem:[#allocation2] sm:$0x3] %vm611_vm5, %v595_v43 }
 0x1fe   : > { %v604_v46 = vcombine.high %v602_v44, %v602_v44  ;;  %614 = vst.msk [vmem:[#allocation2 + $0x2] sm:$0x3] %vm611_vm5, %v602_v44  ;;  %615 = vst.msk [vmem:[#allocation2 + $0x4] sm:$0x3] %vm611_vm5, %v603_v45 }
 0x200   : > { %616 = vst.msk [vmem:[#allocation2 + $0x6] sm:$0x3] %vm611_vm5, %v604_v46 }
 0x203   : > { %v617_v49 = vld [vmem:[#allocation2] sm:$0x3] }
 0x204   : > { %v636_v53 = vrot.slane %v617_v49, %v635_v47  ;;  %v640_v54 = vrot.slane %v617_v49, %v639_v48 }
 0x205   : > { %v618_v55 = vld [vmem:[#allocation2 + $0x2] sm:$0x3]  ;;  %v619_v56 = vld [vmem:[#allocation2 + $0x4] sm:$0x3] }
 0x206   : > { %v644_v60 = vrot.slane %v618_v55, %v635_v47  ;;  %v648_v61 = vrot.slane %v618_v55, %v639_v48  ;;  %v652_v62 = vrot.slane %v619_v56, %v635_v47  ;;  %v656_v63 = vrot.slane %v619_v56, %v639_v48 }
 0x207   : > { %v620_v0 = vld [vmem:[#allocation2 + $0x6] sm:$0x3]  ;;  %v673_v3 = vmul.f32 %v636_v53, %v621_v50  ;;  %v674_v4 = vmul.f32 %v640_v54, %v622_v51 }
 0x208   : > { %v660_v5 = vrot.slane %v620_v0, %v635_v47  ;;  %v664_v6 = vrot.slane %v620_v0, %v639_v48  ;;  %v675_v7 = vmul.f32 %v644_v60, %v623_v52  ;;  %v676_v8 = vmul.f32 %v648_v61, %v624_v57 }
 0x209   : > { %v677_v9 = vmul.f32 %v652_v62, %v625_v58  ;;  %v678_v10 = vmul.f32 %v656_v63, %v626_v59  ;;  %681 = vst [vmem:[%s369_s15] sm:$0xff] %v673_v3  ;;  %682 = vst [vmem:[%s369_s15 + $0x8] sm:$0xff] %v674_v4 }
 0x20a   : > { %v679_v11 = vmul.f32 %v660_v5, %v627_v1  ;;  %v680_v12 = vmul.f32 %v664_v6, %v628_v2  ;;  %683 = vst [vmem:[%s369_s15 + $0x10] sm:$0xff] %v675_v7  ;;  %684 = vst [vmem:[%s369_s15 + $0x18] sm:$0xff] %v676_v8 }
 0x20b   : > { %685 = vst [vmem:[%s369_s15 + $0x20] sm:$0xff] %v677_v9  ;;  %686 = vst [vmem:[%s369_s15 + $0x28] sm:$0xff] %v678_v10 }
 0x20c   : > { %687 = vst [vmem:[%s369_s15 + $0x30] sm:$0xff] %v679_v11  ;;  %688 = vst [vmem:[%s369_s15 + $0x38] sm:$0xff] %v680_v12 }
 0x20d   : > { %1008 = shalt.err (!%p1005_p6)
}
 0x20e   : > { %s1009_s30 = scalar_lea.hbm %s1288_s0, 1024  ;;  %s1013_s21 = scalar_lea.hbm %s1345_s7, 2048 }
 0x20f   : > { %p1010_p7 = scmp.ne.s32.totalorder %s1288_s0, %s1009_s30  ;;  %p1014_p4 = scmp.lt.s32.totalorder %s1288_s0, %s1345_s7 }
 0x210   : > { %p1015_p10 = scmp.lt.s32.totalorder %s1013_s21, %s1009_s30 }
 0x211   : > { %p1011_p1 = pnand %p1010_p7, %p1182_p9 }
 0x212   : > { %p1016_p8 = por %p1015_p10, %p1014_p4 }
 0x213   : > { %p1012_p2 = pneg %p1011_p1 }
 0x215   : > { %p1017_p0 = pnand %p1016_p8, %p1012_p2 }
 0x217   : > { %1020 = shalt.err (!%p1017_p0)
}
 0x218   : > { %s1089_s15 = smov 256   ;;  %s1090_s20 = smov 16  }
 0x219   : > { %859 = dma.vmem_to_hbm [thread:$0]  (%p1182_p9), %s1290_s9, 1024, %s1288_s0, %s690_s8, %s1089_s15, %s1089_s15, %s1090_s20  }
 0x21a PF: > { %s722_s27 = sand.u32 1, %s1059_s24   ;;  %p1357_p3 = scmp.ge.s32.totalorder %s1079_s29, 2 }
 0x21b   : > { %s723_s19 = scalar_lea.sflag [#allocation5], %s722_s27 }
 0x21c   : > { %p869_p13 = pnand %p1357_p3, %p1189_p11 }
 0x21e   : > { %p870_p5 = pneg %p869_p13 }
 0x220   : > { %1054 = dma.done.wait (%p870_p5), %s723_s19, 1024  }
 0x221   : > { %1056 = vsyncadd (%p870_p5), %s723_s19, 4294966272  ;;  %s26_s29 = sadd.s32 1, %s1079_s29   ;;  %s1358_s14 = sld [smem:[#allocation13_spill]] }
 0x222   : > { %p23_p12 = scmp.ge.s32.totalorder %s26_s29, 4   ;;  %s1359_s17 = sld [smem:[#allocation12_spill]] }
 0x223   : > { %s1360_s24 = smov %s1063_s25  ;;  %s1361_s25 = smov %s1067_s26 }
 0x224   : > { %s1363_s27 = smov %s1075_s28  ;;  %25 = sbr.rel (!%p23_p12) target bundleno = 10 (0xa), region = 110 }
 0x227   : > { %s1362_s26 = smov %s1358_s14 }
 0x228   : > { %s1364_s28 = smov %s1359_s17 }
 0x229   :  { %728 = vsyncpa [#allocation4], 1 }
 0x22a   :  { %730 = vsyncpa [#allocation4 + $0x1], 1 }
 0x22b   :  { %731 = vsyncpa [#allocation7], 1 }
 0x22c   :  { %733 = vsyncpa [#allocation7 + $0x1], 1 }
 0x22d   :  { %734 = vsyncpa [#allocation5], 1 }
 0x22e   :  { %736 = vsyncpa [#allocation5 + $0x1], 1 }

</bundles_post_ra>
